<compile_context>
chip_gen: v7x
topology: tpu7x:2x2x1
jax: 0.10.0
libtpu: 0.0.40
codegen_flags: <defaults>
</compile_context>

<pallas_src>
import functools

import jax
import jax.numpy as jnp
from jax import lax
from jax.experimental import pallas as pl
from jax.experimental.pallas import tpu as pltpu

LANE = 128
SUBLANE = 8
MAX_TILE_R = 1024   # (1024, 128) f32 block = 512 KiB; roofline saturates by ~512 rows
NCORES = 2          # leading parallel axis for v7x megacore; clamped to step count


def _bce_blur_kernel(pred_ref, true_ref, acc_ref, *, inv_alpha, n, tile_r,
                     steps_per_core, has_tail):
    c = pl.program_id(0)   # core / outer split (parallel)
    i = pl.program_id(1)   # row-block step within this core's range (arbitrary)

    @pl.when(i == 0)
    def _init():
        acc_ref[...] = jnp.zeros_like(acc_ref)

    x = pred_ref[...].astype(jnp.float32)
    t = true_ref[...].astype(jnp.float32)

    # Numerically-stable BCE with logits (matches torch.nn.BCEWithLogitsLoss):
    #   loss = max(x, 0) - x*t + log(1 + exp(-|x|))
    e = jnp.exp(-jnp.abs(x))                       # reused below for sigmoid
    loss = jnp.maximum(x, 0.0) - x * t + jnp.log1p(e)

    # sigmoid(x) from the same exp:  x >= 0 -> 1/(1+e),  x < 0 -> e/(1+e)
    p = jnp.where(x >= 0.0, 1.0, e) * pl.reciprocal(1.0 + e)
    alpha_factor = 1.0 - jnp.exp((p - t - 1.0) * inv_alpha)
    loss = loss * alpha_factor

    if has_tail:  # static: compiled in only when a padded tail exists
        base = (c * steps_per_core + i) * (tile_r * LANE)
        rid = lax.broadcasted_iota(jnp.int32, (tile_r, LANE), 0)
        lid = lax.broadcasted_iota(jnp.int32, (tile_r, LANE), 1)
        loss = jnp.where(base + rid * LANE + lid < n, loss, 0.0)

    # vreg-shaped partial sum: pure VPU adds, no per-step cross-lane reduce
    acc_ref[...] += jnp.sum(loss.reshape(tile_r // SUBLANE, SUBLANE, LANE), axis=0)


def bce_blur_with_logits_loss(pred, true, alpha=0.05):
    """float32 scalar == BCEBlurWithLogitsLoss(alpha)(pred, true) in PyTorch."""
    assert pred.shape == true.shape
    n = int(pred.size)

    pf = pred.reshape(-1)   # native dtype; contiguous reshape, no copy
    tf = true.reshape(-1)

    rows_needed = pl.cdiv(n, LANE)
    tile_r = min(MAX_TILE_R, SUBLANE * pl.cdiv(rows_needed, SUBLANE))
    block = tile_r * LANE
    total_steps = pl.cdiv(n, block)
    ncores = min(NCORES, total_steps)
    steps_per_core = pl.cdiv(total_steps, ncores)
    rows_padded = ncores * steps_per_core * tile_r
    n_padded = rows_padded * LANE

    pad = n_padded - n
    if pad:
        # Only ragged / oddly-split sizes pay this copy (pad <= ~one block/core);
        # block-aligned inputs take the zero-copy path.
        pf = jnp.pad(pf, (0, pad))
        tf = jnp.pad(tf, (0, pad))

    p2 = pf.reshape(rows_padded, LANE)
    t2 = tf.reshape(rows_padded, LANE)

    kernel = functools.partial(
        _bce_blur_kernel,
        inv_alpha=1.0 / (alpha + 0.0001),
        n=n, tile_r=tile_r, steps_per_core=steps_per_core, has_tail=pad > 0)

    in_map = lambda c, i: (c * steps_per_core + i, 0)
    partials = pl.pallas_call(
        kernel,
        out_shape=jax.ShapeDtypeStruct((ncores * SUBLANE, LANE), jnp.float32),
        grid_spec=pltpu.PrefetchScalarGridSpec(
            num_scalar_prefetch=0,
            grid=(ncores, steps_per_core),
            in_specs=[
                pl.BlockSpec((tile_r, LANE), in_map),
                pl.BlockSpec((tile_r, LANE), in_map),
            ],
            out_specs=pl.BlockSpec((SUBLANE, LANE), lambda c, i: (c, 0)),
        ),
        compiler_params=pltpu.CompilerParams(
            dimension_semantics=("parallel", "arbitrary")),
    )(p2, t2)

    # Tiny final reduce; 1/n computed exactly in Python double at trace time.
    return jnp.sum(partials) * (1.0 / n)


def _reference(pred, true, alpha=0.05):
    x = pred.astype(jnp.float32)
    t = true.astype(jnp.float32)
    loss = jnp.maximum(x, 0.0) - x * t + jnp.log1p(jnp.exp(-jnp.abs(x)))
    p = jax.nn.sigmoid(x)
    loss = loss * (1.0 - jnp.exp((p - t - 1.0) / (alpha + 0.0001)))
    return jnp.mean(loss)


if __name__ == "__main__":
    key = jax.random.PRNGKey(0)
    cases = []

    # 1) NCHW, block-aligned size (zero-copy / no-mask path)
    k1, k2, key = jax.random.split(key, 3)
    cases.append((jax.random.normal(k1, (2, 4, 16, 16), dtype=jnp.float32),
                  (jax.random.uniform(k2, (2, 4, 16, 16)) > 0.5).astype(jnp.float32)))

    # 2) ragged size -> exercises the in-kernel tail mask
    k1, k2, key = jax.random.split(key, 3)
    cases.append((jax.random.normal(k1, (3, 5, 7, 9), dtype=jnp.float32),
                  (jax.random.uniform(k2, (3, 5, 7, 9)) > 0.5).astype(jnp.float32)))

    # 3) bf16 inputs DMA'd in native dtype (compute still f32 in-kernel)
    k1, k2, key = jax.random.split(key, 3)
    cases.append((jax.random.normal(k1, (2, 4, 16, 16), dtype=jnp.bfloat16),
                  (jax.random.uniform(k2, (2, 4, 16, 16)) > 0.5).astype(jnp.bfloat16)))

    for pred, true in cases:
        out = jax.block_until_ready(bce_blur_with_logits_loss(pred, true, alpha=0.05))
        ref = _reference(pred, true, alpha=0.05)
        assert jnp.allclose(out, ref, rtol=1e-4, atol=1e-6), \
            (pred.shape, str(pred.dtype), out, ref)

    print("KERNEL_OK")
</pallas_src>

<mosaic_0001>
module attributes {stable_mosaic.version = 11 : i64} {
  func.func @_bce_blur_kernel(%arg0: i32, %arg1: i32, %arg2: memref<16x128xf32, #tpu.memory_space<vmem>>, %arg3: memref<16x128xf32, #tpu.memory_space<vmem>>, %arg4: memref<8x128xf32, #tpu.memory_space<vmem>>) attributes {dimension_semantics = [#tpu.dimension_semantics<parallel>, #tpu.dimension_semantics<arbitrary>], iteration_bounds = array<i64: 1, 1>, scalar_prefetch = 0 : i64, scratch_operands = 0 : i64, tpu.core_type = #tpu.core_type<tc>, window_params = [{transform_indices = @transform_0, window_bounds = array<i64: 16, 128>}, {transform_indices = @transform_1, window_bounds = array<i64: 16, 128>}, {transform_indices = @transform_2, window_bounds = array<i64: 8, 128>}]} {
    %c0_i32 = arith.constant 0 : i32
    %0 = arith.cmpi eq, %arg1, %c0_i32 : i32
    %1 = arith.extui %0 : i1 to i32
    %c0_i32_0 = arith.constant 0 : i32
    %2 = arith.cmpi ne, %1, %c0_i32_0 : i32
    scf.if %2 {
      %cst_16 = arith.constant 0.000000e+00 : f32
      %37 = vector.broadcast %cst_16 : f32 to vector<8x128xf32>
      %c0_17 = arith.constant 0 : index
      %c0_18 = arith.constant 0 : index
      %38 = vector.load %arg4[%c0_17, %c0_18] : memref<8x128xf32, #tpu.memory_space<vmem>>, vector<8x128xf32>
      tpu.vector_store %arg4[%c0_17, %c0_18], %37 {strides = array<i32>} : memref<8x128xf32, #tpu.memory_space<vmem>>, vector<8x128xf32>,
    } else {
    }
    %c0 = arith.constant 0 : index
    %c0_1 = arith.constant 0 : index
    %3 = vector.load %arg2[%c0, %c0_1] : memref<16x128xf32, #tpu.memory_space<vmem>>, vector<16x128xf32>
    %c0_2 = arith.constant 0 : index
    %c0_3 = arith.constant 0 : index
    %4 = vector.load %arg3[%c0_2, %c0_3] : memref<16x128xf32, #tpu.memory_space<vmem>>, vector<16x128xf32>
    %5 = math.absf %3 : vector<16x128xf32>
    %cst = arith.constant 0.000000e+00 : f32
    %6 = vector.broadcast %cst : f32 to vector<16x128xf32>
    %7 = arith.subf %6, %5 : vector<16x128xf32>
    %8 = math.exp %7 : vector<16x128xf32>
    %cst_4 = arith.constant 0.000000e+00 : f32
    %9 = vector.broadcast %cst_4 : f32 to vector<16x128xf32>
    %10 = arith.maximumf %3, %9 : vector<16x128xf32>
    %11 = arith.mulf %3, %4 : vector<16x128xf32>
    %12 = arith.subf %10, %11 : vector<16x128xf32>
    %13 = math.log1p %8 : vector<16x128xf32>
    %14 = arith.addf %12, %13 : vector<16x128xf32>
    %cst_5 = arith.constant 0.000000e+00 : f32
    %15 = vector.broadcast %cst_5 : f32 to vector<16x128xf32>
    %16 = arith.cmpf oge, %3, %15 : vector<16x128xf32>
    %cst_6 = arith.constant 1.000000e+00 : f32
    %17 = vector.broadcast %cst_6 : f32 to vector<16x128xf32>
    %18 = arith.select %16, %17, %8 : vector<16x128xi1>, vector<16x128xf32>
    %cst_7 = arith.constant 1.000000e+00 : f32
    %19 = vector.broadcast %cst_7 : f32 to vector<16x128xf32>
    %20 = arith.addf %19, %8 : vector<16x128xf32>
    %21 = tpu.reciprocal %20 : vector<16x128xf32> -> vector<16x128xf32>
    %22 = arith.mulf %18, %21 : vector<16x128xf32>
    %23 = arith.subf %22, %4 : vector<16x128xf32>
    %cst_8 = arith.constant 1.000000e+00 : f32
    %24 = vector.broadcast %cst_8 : f32 to vector<16x128xf32>
    %25 = arith.subf %23, %24 : vector<16x128xf32>
    %cst_9 = arith.constant 19.9600792 : f32
    %26 = vector.broadcast %cst_9 : f32 to vector<16x128xf32>
    %27 = arith.mulf %25, %26 : vector<16x128xf32>
    %28 = math.exp %27 : vector<16x128xf32>
    %cst_10 = arith.constant 1.000000e+00 : f32
    %29 = vector.broadcast %cst_10 : f32 to vector<16x128xf32>
    %30 = arith.subf %29, %28 : vector<16x128xf32>
    %31 = arith.mulf %14, %30 : vector<16x128xf32>
    %c0_11 = arith.constant 0 : index
    %c0_12 = arith.constant 0 : index
    %32 = vector.load %arg4[%c0_11, %c0_12] : memref<8x128xf32, #tpu.memory_space<vmem>>, vector<8x128xf32>
    %33 = vector.shape_cast %31 : vector<16x128xf32> to vector<2x8x128xf32>
    %cst_13 = arith.constant dense<0.000000e+00> : vector<8x128xf32>
    %34 = vector.multi_reduction <add>, %33, %cst_13 [0] : vector<2x8x128xf32> to vector<8x128xf32>
    %35 = arith.addf %32, %34 : vector<8x128xf32>
    %c0_14 = arith.constant 0 : index
    %c0_15 = arith.constant 0 : index
    %36 = vector.load %arg4[%c0_14, %c0_15] : memref<8x128xf32, #tpu.memory_space<vmem>>, vector<8x128xf32>
    tpu.vector_store %arg4[%c0_14, %c0_15], %35 {strides = array<i32>} : memref<8x128xf32, #tpu.memory_space<vmem>>, vector<8x128xf32>,
    return
  }
  func.func @transform_0(%arg0: i32, %arg1: i32) -> (i32, i32) {
    %c1_i32 = arith.constant 1 : i32
    %0 = arith.muli %arg0, %c1_i32 : i32
    %1 = arith.addi %0, %arg1 : i32
    %c0_i32 = arith.constant 0 : i32
    %c0_i32_0 = arith.constant 0 : i32
    return %1, %c0_i32 : i32, i32
  }
  func.func @transform_1(%arg0: i32, %arg1: i32) -> (i32, i32) {
    %c1_i32 = arith.constant 1 : i32
    %0 = arith.muli %arg0, %c1_i32 : i32
    %1 = arith.addi %0, %arg1 : i32
    %c0_i32 = arith.constant 0 : i32
    %c0_i32_0 = arith.constant 0 : i32
    return %1, %c0_i32 : i32, i32
  }
  func.func @transform_2(%arg0: i32, %arg1: i32) -> (i32, i32) {
    %c0_i32 = arith.constant 0 : i32
    %c0_i32_0 = arith.constant 0 : i32
    return %arg0, %c0_i32 : i32, i32
  }
}

</mosaic_0001>

<bundles_post_ra>
// kernel: tpu_custom_call.1
= control target key start
LH: loop header
LB: loop body
LE: loop exit
PB: predicated region body
PF: predicated region fallthrough
CT: control target
= control target key end

     0   :  { %7 = vsyncpa [#allocation3], 0  ;;  %s291_s0 = inlined_call_operand.hbm [shape: f32[16,128], index: 0, kind: input, shape index: {}]   ;;  %s292_s1 = inlined_call_operand.hbm [shape: f32[16,128], index: 1, kind: input, shape index: {}]   ;;  %s293_s2 = inlined_call_operand.hbm [shape: f32[8,128], index: 2, kind: output, shape index: {}]  }
   0x1   :  { %8 = vsyncpa [#allocation6], 0 }
   0x2   :  { %9 = vsyncpa [#allocation4], 0  ;;  %s235_s9 = smov [#allocation2]   ;;  %s163_s13 = scalar_lea.hbm %s291_s0, 256 }
   0x3   :  { %s19_s10 = sshll.u32 %s235_s9, 4  ;;  %p164_p0 = scmp.ne.s32.totalorder %s291_s0, %s163_s13  ;;  %s20_s10 = int_to_ptr.vmem [resolvable:$true] %s19_s10 }
   0x4   :  { %p167_p1 = scmp.lt.u32.totalorder %s163_s13, %s291_s0 }
   0x6   :  { %p169_p2 = pnand %p167_p1, %p164_p0 }
   0x8   :  { %172 = shalt.err (!%p169_p2)
}
   0x9   :  { %s173_s18 = scalar_lea.vmem %s20_s10, 256  ;;  %p178_p4 = scmp.lt.s32.totalorder %s20_s10, %s20_s10 }
   0xa   :  { %p174_p3 = scmp.ne.s32.totalorder %s20_s10, %s173_s18  ;;  %p179_p5 = scmp.lt.s32.totalorder %s173_s18, %s173_s18 }
   0xc   :  { %p180_p6 = por %p179_p5, %p178_p4 }
   0xe   :  { %p181_p7 = pnand %p180_p6, %p174_p3 }
  0x10   :  { %184 = shalt.err (!%p181_p7)
}
  0x11   :  { %s236_s19 = smov 128   ;;  %s237_s20 = smov 8  }
  0x12   :  { %25 = dma.hbm_to_vmem [thread:$0]  %s291_s0, 256, %s20_s10, [#allocation3], %s236_s19, %s236_s19, %s237_s20  }
  0x13   :  { %s238_s23 = smov [#allocation5]   ;;  %s185_s27 = scalar_lea.hbm %s292_s1, 256 }
  0x14   :  { %s35_s24 = sshll.u32 %s238_s23, 4  ;;  %p186_p8 = scmp.ne.s32.totalorder %s292_s1, %s185_s27  ;;  %s36_s24 = int_to_ptr.vmem [resolvable:$true] %s35_s24 }
  0x15   :  { %p189_p9 = scmp.lt.u32.totalorder %s185_s27, %s292_s1 }
  0x17   :  { %p191_p10 = pnand %p189_p9, %p186_p8 }
  0x19   :  { %194 = shalt.err (!%p191_p10)
}
  0x1a   :  { %s195_s4 = scalar_lea.vmem %s36_s24, 256  ;;  %p200_p12 = scmp.lt.s32.totalorder %s36_s24, %s36_s24 }
  0x1b   :  { %p196_p11 = scmp.ne.s32.totalorder %s36_s24, %s195_s4  ;;  %p201_p13 = scmp.lt.s32.totalorder %s195_s4, %s195_s4 }
  0x1d   :  { %p202_p0 = por %p201_p13, %p200_p12 }
  0x1f   :  { %p203_p1 = pnand %p202_p0, %p196_p11 }
  0x21   :  { %206 = shalt.err (!%p203_p1)
}
  0x22   :  { %41 = dma.hbm_to_vmem [thread:$0]  %s292_s1, 256, %s36_s24, [#allocation6], %s236_s19, %s236_s19, %s237_s20  }
  0x23   :  { %229 = dma.done.wait [#allocation3], 256  }
  0x24   :  { %230 = vsyncadd [#allocation3], 4294967040 }
  0x25   :  { %231 = dma.done.wait [#allocation6], 256  }
  0x26   :  { %232 = vsyncadd [#allocation6], 4294967040  ;;  %v57_v0 = vld [vmem:[#allocation2] sm:$0xff]  ;;  %v58_v1 = vld [vmem:[#allocation2 + $0x8] sm:$0xff]  ;;  %s239_s1 = smov [#allocation7]  }
  0x27   :  { %v61_v2 = vand.u32 2147483647, %v57_v0  ;;  %v62_v3 = vand.u32 2147483647, %v58_v1  ;;  %vm95_vm0 = vcmp.ge.f32.partialorder %v57_v0, 0.0  ;;  %vm96_vm1 = vcmp.ge.f32.partialorder %v58_v1, 0.0 }
  0x28   :  { %v59_v15 = vld [vmem:[#allocation5] sm:$0xff]  ;;  %v60_v17 = vld [vmem:[#allocation5 + $0x8] sm:$0xff]  ;;  %v69_v36 = vmax.f32 %v57_v0, 0.0  ;;  %v70_v38 = vmax.f32 %v58_v1, 0.0  ;;  %s129_s6 = sshll.u32 %s239_s1, 4  ;;  %s130_s6 = int_to_ptr.vmem [resolvable:$true] %s129_s6 }
  0x29   :  { %v63_v4 = vsub.f32 0.0, %v61_v2  ;;  %v64_v5 = vsub.f32 0.0, %v62_v3  ;;  %v71_v37 = vmul.f32 %v59_v15, %v57_v0  ;;  %v72_v39 = vmul.f32 %v60_v17, %v58_v1  ;;  %s207_s7 = scalar_lea.vmem %s130_s6, 128  ;;  %p212_p3 = scmp.lt.s32.totalorder %s130_s6, %s130_s6 }
  0x2a   :  { %p208_p2 = scmp.ne.s32.totalorder %s130_s6, %s207_s7  ;;  %p213_p4 = scmp.lt.s32.totalorder %s207_s7, %s207_s7 }
  0x2b   :  { %v65_v6 = vmul.f32 1.442695, %v63_v4  ;;  %v67_v7 = vmul.f32 1.442695, %v64_v5  ;;  %v73_v44 = vsub.f32 %v69_v36, %v71_v37  ;;  %v74_v45 = vsub.f32 %v70_v38, %v72_v39 }
  0x2c   :  { %p214_p5 = por %p213_p4, %p212_p3 }
  0x2d   :  { %147 = vpow2.f32 %v65_v6 }
  0x2e   :  { %149 = vpow2.f32 %v67_v7  ;;  %p215_p6 = pnand %p214_p5, %p208_p2 }
  0x37   :  { %v148_v8 = vpop.eup %147 }
  0x38   :  { %v150_v9 = vpop.eup %149  ;;  %v75_v10 = vadd.f32 1.0, %v148_v8  ;;  %v97_v12 = vsel %vm95_vm0, 1.0, %v148_v8  ;;  %v78_v22 = vmul.f32 -0.5, %v148_v8  ;;  %v81_v31 = vand.u32 2147483647, %v148_v8 }
  0x39   :  { %v84_v11 = vadd.f32 1.0, %v150_v9  ;;  %v98_v13 = vsel %vm96_vm1, 1.0, %v150_v9  ;;  %v87_v24 = vmul.f32 -0.5, %v150_v9  ;;  %v90_v35 = vand.u32 2147483647, %v150_v9 }
  0x3a   :  { %151 = vrcp.f32 %v75_v10  ;;  %v79_v28 = vadd.f32 1.0, %v78_v22  ;;  %vm82_vm2 = vcmp.lt.f32.partialorder %v81_v31, 0.0004427343 }
  0x3b   :  { %153 = vrcp.f32 %v84_v11  ;;  %v88_v32 = vadd.f32 1.0, %v87_v24  ;;  %vm91_vm3 = vcmp.lt.f32.partialorder %v90_v35, 0.0004427343 }
  0x3c   :  { %155 = vlog2.f32 %v75_v10  ;;  %v80_v41 = vmul.f32 %v148_v8, %v79_v28 }
  0x3d   :  { %157 = vlog2.f32 %v84_v11  ;;  %v89_v43 = vmul.f32 %v150_v9, %v88_v32 }
  0x44   :  { %v152_v14 = vpop.eup %151 }
  0x45   :  { %v154_v16 = vpop.eup %153  ;;  %v103_v18 = vmul.f32 %v152_v14, %v97_v12 }
  0x46   :  { %v104_v19 = vmul.f32 %v154_v16, %v98_v13  ;;  %v156_v30 = vpop.eup %155 }
  0x47   :  { %v105_v20 = vsub.f32 %v103_v18, %v59_v15  ;;  %v158_v34 = vpop.eup %157  ;;  %v77_v40 = vmul.f32 0.6931472, %v156_v30 }
  0x48   :  { %v106_v21 = vsub.f32 %v104_v19, %v60_v17  ;;  %v86_v42 = vmul.f32 0.6931472, %v158_v34 }
  0x49   :  { %v139_v23 = vadd.f32 -1.0, %v105_v20  ;;  %v83_v46 = vsel %vm82_vm2, %v80_v41, %v77_v40 }
  0x4a   :  { %v140_v25 = vadd.f32 -1.0, %v106_v21  ;;  %v92_v47 = vsel %vm91_vm3, %v89_v43, %v86_v42  ;;  %v93_v48 = vadd.f32 %v83_v46, %v73_v44 }
  0x4b   :  { %v109_v26 = vmul.f32 19.96008, %v139_v23  ;;  %v94_v50 = vadd.f32 %v92_v47, %v74_v45 }
  0x4c   :  { %v110_v27 = vmul.f32 19.96008, %v140_v25 }
  0x4d   :  { %v111_v29 = vmul.f32 1.442695, %v109_v26 }
  0x4e   :  { %v113_v33 = vmul.f32 1.442695, %v110_v27 }
  0x4f   :  { %159 = vpow2.f32 %v111_v29 }
  0x50   :  { %161 = vpow2.f32 %v113_v33 }
  0x59   :  { %v160_v49 = vpop.eup %159 }
  0x5a   :  { %v162_v51 = vpop.eup %161  ;;  %v115_v52 = vsub.f32 1.0, %v160_v49 }
  0x5b   :  { %v116_v53 = vsub.f32 1.0, %v162_v51 }
  0x5c   :  { %v117_v54 = vmul.f32 %v115_v52, %v93_v48 }
  0x5d   :  { %v118_v55 = vmul.f32 %v116_v53, %v94_v50 }
  0x5f   :  { %v120_v56 = vadd.f32 %v118_v55, %v117_v54 }
  0x61   :  { %122 = vst [vmem:[#allocation7] sm:$0xff] %v120_v56 }
  0x62   :  { %218 = shalt.err (!%p215_p6)
}
  0x63   :  { %s219_s10 = scalar_lea.hbm %s293_s2, 128 }
  0x64   :  { %p220_p7 = scmp.ne.s32.totalorder %s293_s2, %s219_s10  ;;  %p223_p8 = scmp.lt.u32.totalorder %s219_s10, %s293_s2 }
  0x66   :  { %p225_p9 = pnand %p223_p8, %p220_p7 }
  0x68   :  { %228 = shalt.err (!%p225_p9)
}
  0x69   :  { %132 = dma.vmem_to_hbm [thread:$0]  %s130_s6, 128, %s293_s2, [#allocation4]  }
  0x6a   :  { %233 = dma.done.wait [#allocation4], 128  }
  0x6b   :  { %234 = vsyncadd [#allocation4], 4294967168 }
  0x6c   :  { %136 = vsyncpa [#allocation3], 1 }
  0x6d   :  { %137 = vsyncpa [#allocation6], 1 }
  0x6e   :  { %138 = vsyncpa [#allocation4], 1 }

</bundles_post_ra>
